<compile_context>
chip_gen: v7x
topology: tpu7x:2x2x1
jax: 0.10.0
libtpu: 0.0.40
codegen_flags: <defaults>
</compile_context>

<pallas_src>
import math
import functools

import jax
import jax.numpy as jnp
from jax import lax
from jax.experimental import pallas as pl
from jax.experimental.pallas import tpu as pltpu


def _maxpool_kernel(x_ref, o_ref, *, ksize, stride, oh, ow):
    """Separable max-pool on one (rc_tile, H, W) block.

    x_ref: (rc_tile, H, W)   VMEM tile (W on lanes, H on sublanes)
    o_ref: (rc_tile, OH, OW) VMEM tile
    All pooling parameters are static so every slice resolves at trace time.
    One output row is produced per iteration and stored immediately, keeping
    live temporaries to ~one H-window of the input block.
    """
    for i in range(oh):
        # H pass for this output row: contiguous sublane slice + reduce.
        hwin = x_ref[:, i * stride: i * stride + ksize, :]      # (rc, k, W)
        hrow = jnp.max(hwin, axis=1, keepdims=True)             # (rc, 1, W)
        # W pass: ow contiguous lane slices + reduce, assembled once.
        pieces = [
            jnp.max(hrow[:, :, j * stride: j * stride + ksize],
                    axis=2, keepdims=True)                      # (rc, 1, 1)
            for j in range(ow)
        ]
        row = pieces[0] if ow == 1 else jnp.concatenate(pieces, axis=2)
        o_ref[:, i:i + 1, :] = row                              # (rc, 1, ow)


def _round_up(x, m):
    return ((x + m - 1) // m) * m


def _pick_rc_tile(rc, h, w, oh, ow, itemsize):
    """Largest safe divisor of RC = N*C per padded-VMEM accounting.

    Padded bytes per channel:
      input  = round_up(H, sublanes) * round_up(W, 128) * itemsize
      output = round_up(OH, sublanes) * round_up(OW, 128) * itemsize
    Pallas double-buffers both blocks and the kernel needs ~1 extra input
    block of temporaries, so a single (in+out) block is capped at 4 MiB
    (=> < ~12 MiB resident, comfortably under v5e's 16 MiB default scoped
    limit and v7x's 64 MiB physical VMEM).  Blocks target ~1.5 MiB with
    >= 8 grid steps when the problem is big enough for pipelining / two
    TensorCores to matter.
    """
    sublanes = max(8, 32 // itemsize)          # f32 -> 8, bf16 -> 16, int8 -> 32
    in_ch = _round_up(h, sublanes) * _round_up(w, 128) * itemsize
    out_ch = _round_up(oh, sublanes) * _round_up(ow, 128) * itemsize

    def block_bytes(d):
        return d * (in_ch + out_ch)

    CAP = 4 * 1024 * 1024
    TARGET = 3 * 512 * 1024                    # ~1.5 MiB
    MIN_STEPS = 8

    divisors = [d for d in range(1, rc + 1) if rc % d == 0]
    fit = [d for d in divisors if block_bytes(d) <= CAP]
    if not fit:
        # TODO(synk): add H-row tiling; a single channel already busts the cap.
        return 1

    # Only chase step count when there is real work to overlap.
    if block_bytes(rc) >= MIN_STEPS * 256 * 1024:
        good = [d for d in fit
                if block_bytes(d) <= TARGET and rc // d >= MIN_STEPS]
        if good:
            return max(good)
        good = [d for d in fit if rc // d >= MIN_STEPS]
        if good:
            return max(good)

    small = [d for d in fit if block_bytes(d) <= TARGET]
    return max(small) if small else max(fit)


def spp_forward(x_nchw, in_size, out_size):
    """Equivalent of SPP(in_size, out_size).forward(x) for NCHW input."""
    assert in_size >= out_size
    ksize = math.ceil(in_size / out_size)
    stride = in_size // out_size

    n, c, h, w = x_nchw.shape
    assert h == in_size and w == in_size
    oh = (h - ksize) // stride + 1
    ow = (w - ksize) // stride + 1

    rc = n * c
    x_flat = x_nchw.reshape(rc, h, w)          # free, contiguous reshape
    itemsize = jnp.dtype(x_nchw.dtype).itemsize
    rc_tile = _pick_rc_tile(rc, h, w, oh, ow, itemsize)
    grid = (rc // rc_tile,)

    kern = functools.partial(
        _maxpool_kernel, ksize=ksize, stride=stride, oh=oh, ow=ow
    )

    out_flat = pl.pallas_call(
        kern,
        out_shape=jax.ShapeDtypeStruct((rc, oh, ow), x_nchw.dtype),
        grid=grid,
        in_specs=[pl.BlockSpec((rc_tile, h, w), lambda i: (i, 0, 0))],
        out_specs=pl.BlockSpec((rc_tile, oh, ow), lambda i: (i, 0, 0)),
        compiler_params=pltpu.CompilerParams(
            dimension_semantics=("parallel",),
        ),
        cost_estimate=pl.CostEstimate(
            flops=rc * oh * ow * ksize * ksize,
            transcendentals=0,
            bytes_accessed=rc * (h * w + oh * ow) * itemsize,
        ),
    )(x_flat)
    return out_flat.reshape(n, c, oh, ow)


def spp_reference(x_nchw, in_size, out_size):
    """Pure-JAX reference identical to nn.MaxPool2d(ceil(i/o), floor(i/o))."""
    ksize = math.ceil(in_size / out_size)
    stride = in_size // out_size
    return lax.reduce_window(
        x_nchw,
        -jnp.inf,                       # float inputs only (reference-only)
        lax.max,
        window_dimensions=(1, 1, ksize, ksize),
        window_strides=(1, 1, stride, stride),
        padding="VALID",
    )


if __name__ == "__main__":
    key = jax.random.PRNGKey(0)
    # Small NCHW input consistent with the module: batch=2, channels=4, 16x16
    x = jax.random.normal(key, (2, 4, 16, 16), dtype=jnp.float32)

    ok = True

    # Case 1: divisible (kernel == stride == 4) -> (2, 4, 4, 4)
    out1 = jax.block_until_ready(spp_forward(x, in_size=16, out_size=4))
    ref1 = spp_reference(x, in_size=16, out_size=4)
    ok &= out1.shape == (2, 4, 4, 4)
    ok &= bool(jnp.array_equal(out1, ref1))

    # Case 2: non-divisible (kernel=4, stride=3) -> (2, 4, 5, 5)
    out2 = jax.block_until_ready(spp_forward(x, in_size=16, out_size=5))
    ref2 = spp_reference(x, in_size=16, out_size=5)
    ok &= out2.shape == (2, 4, 5, 5)
    ok &= bool(jnp.array_equal(out2, ref2))

    if ok:
        print("KERNEL_OK")
    else:
        raise SystemExit("mismatch vs reference max-pool")
</pallas_src>

<mosaic_0001>
module attributes {stable_mosaic.version = 11 : i64} {
  func.func @_maxpool_kernel(%arg0: i32, %arg1: memref<8x16x16xf32, #tpu.memory_space<vmem>>, %arg2: memref<8x4x4xf32, #tpu.memory_space<vmem>>) attributes {dimension_semantics = [#tpu.dimension_semantics<parallel>], iteration_bounds = array<i64: 1>, scalar_prefetch = 0 : i64, scratch_operands = 0 : i64, tpu.core_type = #tpu.core_type<tc>, window_params = [{transform_indices = @transform_0, window_bounds = array<i64: 8, 16, 16>}, {transform_indices = @transform_1, window_bounds = array<i64: 8, 4, 4>}]} {
    %c0 = arith.constant 0 : index
    %c0_0 = arith.constant 0 : index
    %c0_1 = arith.constant 0 : index
    %0 = vector.load %arg1[%c0, %c0_0, %c0_1] : memref<8x16x16xf32, #tpu.memory_space<vmem>>, vector<8x4x16xf32>
    %cst = arith.constant dense<0xFF800000> : vector<8x16xf32>
    %1 = vector.multi_reduction <maximumf>, %0, %cst [1] : vector<8x4x16xf32> to vector<8x16xf32>
    %2 = vector.shape_cast %1 : vector<8x16xf32> to vector<8x1x16xf32>
    %3 = vector.extract_strided_slice %2 {offsets = [0, 0, 0], sizes = [8, 1, 4], strides = [1, 1, 1]} : vector<8x1x16xf32> to vector<8x1x4xf32>
    %cst_2 = arith.constant dense<0xFF800000> : vector<8x1xf32>
    %4 = vector.multi_reduction <maximumf>, %3, %cst_2 [2] : vector<8x1x4xf32> to vector<8x1xf32>
    %5 = vector.shape_cast %4 : vector<8x1xf32> to vector<8x1x1xf32>
    %6 = vector.extract_strided_slice %2 {offsets = [0, 0, 4], sizes = [8, 1, 4], strides = [1, 1, 1]} : vector<8x1x16xf32> to vector<8x1x4xf32>
    %cst_3 = arith.constant dense<0xFF800000> : vector<8x1xf32>
    %7 = vector.multi_reduction <maximumf>, %6, %cst_3 [2] : vector<8x1x4xf32> to vector<8x1xf32>
    %8 = vector.shape_cast %7 : vector<8x1xf32> to vector<8x1x1xf32>
    %9 = vector.extract_strided_slice %2 {offsets = [0, 0, 8], sizes = [8, 1, 4], strides = [1, 1, 1]} : vector<8x1x16xf32> to vector<8x1x4xf32>
    %cst_4 = arith.constant dense<0xFF800000> : vector<8x1xf32>
    %10 = vector.multi_reduction <maximumf>, %9, %cst_4 [2] : vector<8x1x4xf32> to vector<8x1xf32>
    %11 = vector.shape_cast %10 : vector<8x1xf32> to vector<8x1x1xf32>
    %12 = vector.extract_strided_slice %2 {offsets = [0, 0, 12], sizes = [8, 1, 4], strides = [1, 1, 1]} : vector<8x1x16xf32> to vector<8x1x4xf32>
    %cst_5 = arith.constant dense<0xFF800000> : vector<8x1xf32>
    %13 = vector.multi_reduction <maximumf>, %12, %cst_5 [2] : vector<8x1x4xf32> to vector<8x1xf32>
    %14 = vector.shape_cast %13 : vector<8x1xf32> to vector<8x1x1xf32>
    %15 = tpu.concatenate %5, %8, %11, %14 in 2 : vector<8x1x1xf32>, vector<8x1x1xf32>, vector<8x1x1xf32>, vector<8x1x1xf32> -> vector<8x1x4xf32>
    %c0_6 = arith.constant 0 : index
    %c0_7 = arith.constant 0 : index
    %c0_8 = arith.constant 0 : index
    %16 = vector.load %arg2[%c0_6, %c0_7, %c0_8] : memref<8x4x4xf32, #tpu.memory_space<vmem>>, vector<8x1x4xf32>
    tpu.vector_store %arg2[%c0_6, %c0_7, %c0_8], %15 {strides = array<i32>} : memref<8x4x4xf32, #tpu.memory_space<vmem>>, vector<8x1x4xf32>,
    %c0_9 = arith.constant 0 : index
    %c4 = arith.constant 4 : index
    %c0_10 = arith.constant 0 : index
    %17 = vector.load %arg1[%c0_9, %c4, %c0_10] : memref<8x16x16xf32, #tpu.memory_space<vmem>>, vector<8x4x16xf32>
    %cst_11 = arith.constant dense<0xFF800000> : vector<8x16xf32>
    %18 = vector.multi_reduction <maximumf>, %17, %cst_11 [1] : vector<8x4x16xf32> to vector<8x16xf32>
    %19 = vector.shape_cast %18 : vector<8x16xf32> to vector<8x1x16xf32>
    %20 = vector.extract_strided_slice %19 {offsets = [0, 0, 0], sizes = [8, 1, 4], strides = [1, 1, 1]} : vector<8x1x16xf32> to vector<8x1x4xf32>
    %cst_12 = arith.constant dense<0xFF800000> : vector<8x1xf32>
    %21 = vector.multi_reduction <maximumf>, %20, %cst_12 [2] : vector<8x1x4xf32> to vector<8x1xf32>
    %22 = vector.shape_cast %21 : vector<8x1xf32> to vector<8x1x1xf32>
    %23 = vector.extract_strided_slice %19 {offsets = [0, 0, 4], sizes = [8, 1, 4], strides = [1, 1, 1]} : vector<8x1x16xf32> to vector<8x1x4xf32>
    %cst_13 = arith.constant dense<0xFF800000> : vector<8x1xf32>
    %24 = vector.multi_reduction <maximumf>, %23, %cst_13 [2] : vector<8x1x4xf32> to vector<8x1xf32>
    %25 = vector.shape_cast %24 : vector<8x1xf32> to vector<8x1x1xf32>
    %26 = vector.extract_strided_slice %19 {offsets = [0, 0, 8], sizes = [8, 1, 4], strides = [1, 1, 1]} : vector<8x1x16xf32> to vector<8x1x4xf32>
    %cst_14 = arith.constant dense<0xFF800000> : vector<8x1xf32>
    %27 = vector.multi_reduction <maximumf>, %26, %cst_14 [2] : vector<8x1x4xf32> to vector<8x1xf32>
    %28 = vector.shape_cast %27 : vector<8x1xf32> to vector<8x1x1xf32>
    %29 = vector.extract_strided_slice %19 {offsets = [0, 0, 12], sizes = [8, 1, 4], strides = [1, 1, 1]} : vector<8x1x16xf32> to vector<8x1x4xf32>
    %cst_15 = arith.constant dense<0xFF800000> : vector<8x1xf32>
    %30 = vector.multi_reduction <maximumf>, %29, %cst_15 [2] : vector<8x1x4xf32> to vector<8x1xf32>
    %31 = vector.shape_cast %30 : vector<8x1xf32> to vector<8x1x1xf32>
    %32 = tpu.concatenate %22, %25, %28, %31 in 2 : vector<8x1x1xf32>, vector<8x1x1xf32>, vector<8x1x1xf32>, vector<8x1x1xf32> -> vector<8x1x4xf32>
    %c0_16 = arith.constant 0 : index
    %c1 = arith.constant 1 : index
    %c0_17 = arith.constant 0 : index
    %33 = vector.load %arg2[%c0_16, %c1, %c0_17] : memref<8x4x4xf32, #tpu.memory_space<vmem>>, vector<8x1x4xf32>
    tpu.vector_store %arg2[%c0_16, %c1, %c0_17], %32 {strides = array<i32>} : memref<8x4x4xf32, #tpu.memory_space<vmem>>, vector<8x1x4xf32>,
    %c0_18 = arith.constant 0 : index
    %c8 = arith.constant 8 : index
    %c0_19 = arith.constant 0 : index
    %34 = vector.load %arg1[%c0_18, %c8, %c0_19] : memref<8x16x16xf32, #tpu.memory_space<vmem>>, vector<8x4x16xf32>
    %cst_20 = arith.constant dense<0xFF800000> : vector<8x16xf32>
    %35 = vector.multi_reduction <maximumf>, %34, %cst_20 [1] : vector<8x4x16xf32> to vector<8x16xf32>
    %36 = vector.shape_cast %35 : vector<8x16xf32> to vector<8x1x16xf32>
    %37 = vector.extract_strided_slice %36 {offsets = [0, 0, 0], sizes = [8, 1, 4], strides = [1, 1, 1]} : vector<8x1x16xf32> to vector<8x1x4xf32>
    %cst_21 = arith.constant dense<0xFF800000> : vector<8x1xf32>
    %38 = vector.multi_reduction <maximumf>, %37, %cst_21 [2] : vector<8x1x4xf32> to vector<8x1xf32>
    %39 = vector.shape_cast %38 : vector<8x1xf32> to vector<8x1x1xf32>
    %40 = vector.extract_strided_slice %36 {offsets = [0, 0, 4], sizes = [8, 1, 4], strides = [1, 1, 1]} : vector<8x1x16xf32> to vector<8x1x4xf32>
    %cst_22 = arith.constant dense<0xFF800000> : vector<8x1xf32>
    %41 = vector.multi_reduction <maximumf>, %40, %cst_22 [2] : vector<8x1x4xf32> to vector<8x1xf32>
    %42 = vector.shape_cast %41 : vector<8x1xf32> to vector<8x1x1xf32>
    %43 = vector.extract_strided_slice %36 {offsets = [0, 0, 8], sizes = [8, 1, 4], strides = [1, 1, 1]} : vector<8x1x16xf32> to vector<8x1x4xf32>
    %cst_23 = arith.constant dense<0xFF800000> : vector<8x1xf32>
    %44 = vector.multi_reduction <maximumf>, %43, %cst_23 [2] : vector<8x1x4xf32> to vector<8x1xf32>
    %45 = vector.shape_cast %44 : vector<8x1xf32> to vector<8x1x1xf32>
    %46 = vector.extract_strided_slice %36 {offsets = [0, 0, 12], sizes = [8, 1, 4], strides = [1, 1, 1]} : vector<8x1x16xf32> to vector<8x1x4xf32>
    %cst_24 = arith.constant dense<0xFF800000> : vector<8x1xf32>
    %47 = vector.multi_reduction <maximumf>, %46, %cst_24 [2] : vector<8x1x4xf32> to vector<8x1xf32>
    %48 = vector.shape_cast %47 : vector<8x1xf32> to vector<8x1x1xf32>
    %49 = tpu.concatenate %39, %42, %45, %48 in 2 : vector<8x1x1xf32>, vector<8x1x1xf32>, vector<8x1x1xf32>, vector<8x1x1xf32> -> vector<8x1x4xf32>
    %c0_25 = arith.constant 0 : index
    %c2 = arith.constant 2 : index
    %c0_26 = arith.constant 0 : index
    %50 = vector.load %arg2[%c0_25, %c2, %c0_26] : memref<8x4x4xf32, #tpu.memory_space<vmem>>, vector<8x1x4xf32>
    tpu.vector_store %arg2[%c0_25, %c2, %c0_26], %49 {strides = array<i32>} : memref<8x4x4xf32, #tpu.memory_space<vmem>>, vector<8x1x4xf32>,
    %c0_27 = arith.constant 0 : index
    %c12 = arith.constant 12 : index
    %c0_28 = arith.constant 0 : index
    %51 = vector.load %arg1[%c0_27, %c12, %c0_28] : memref<8x16x16xf32, #tpu.memory_space<vmem>>, vector<8x4x16xf32>
    %cst_29 = arith.constant dense<0xFF800000> : vector<8x16xf32>
    %52 = vector.multi_reduction <maximumf>, %51, %cst_29 [1] : vector<8x4x16xf32> to vector<8x16xf32>
    %53 = vector.shape_cast %52 : vector<8x16xf32> to vector<8x1x16xf32>
    %54 = vector.extract_strided_slice %53 {offsets = [0, 0, 0], sizes = [8, 1, 4], strides = [1, 1, 1]} : vector<8x1x16xf32> to vector<8x1x4xf32>
    %cst_30 = arith.constant dense<0xFF800000> : vector<8x1xf32>
    %55 = vector.multi_reduction <maximumf>, %54, %cst_30 [2] : vector<8x1x4xf32> to vector<8x1xf32>
    %56 = vector.shape_cast %55 : vector<8x1xf32> to vector<8x1x1xf32>
    %57 = vector.extract_strided_slice %53 {offsets = [0, 0, 4], sizes = [8, 1, 4], strides = [1, 1, 1]} : vector<8x1x16xf32> to vector<8x1x4xf32>
    %cst_31 = arith.constant dense<0xFF800000> : vector<8x1xf32>
    %58 = vector.multi_reduction <maximumf>, %57, %cst_31 [2] : vector<8x1x4xf32> to vector<8x1xf32>
    %59 = vector.shape_cast %58 : vector<8x1xf32> to vector<8x1x1xf32>
    %60 = vector.extract_strided_slice %53 {offsets = [0, 0, 8], sizes = [8, 1, 4], strides = [1, 1, 1]} : vector<8x1x16xf32> to vector<8x1x4xf32>
    %cst_32 = arith.constant dense<0xFF800000> : vector<8x1xf32>
    %61 = vector.multi_reduction <maximumf>, %60, %cst_32 [2] : vector<8x1x4xf32> to vector<8x1xf32>
    %62 = vector.shape_cast %61 : vector<8x1xf32> to vector<8x1x1xf32>
    %63 = vector.extract_strided_slice %53 {offsets = [0, 0, 12], sizes = [8, 1, 4], strides = [1, 1, 1]} : vector<8x1x16xf32> to vector<8x1x4xf32>
    %cst_33 = arith.constant dense<0xFF800000> : vector<8x1xf32>
    %64 = vector.multi_reduction <maximumf>, %63, %cst_33 [2] : vector<8x1x4xf32> to vector<8x1xf32>
    %65 = vector.shape_cast %64 : vector<8x1xf32> to vector<8x1x1xf32>
    %66 = tpu.concatenate %56, %59, %62, %65 in 2 : vector<8x1x1xf32>, vector<8x1x1xf32>, vector<8x1x1xf32>, vector<8x1x1xf32> -> vector<8x1x4xf32>
    %c0_34 = arith.constant 0 : index
    %c3 = arith.constant 3 : index
    %c0_35 = arith.constant 0 : index
    %67 = vector.load %arg2[%c0_34, %c3, %c0_35] : memref<8x4x4xf32, #tpu.memory_space<vmem>>, vector<8x1x4xf32>
    tpu.vector_store %arg2[%c0_34, %c3, %c0_35], %66 {strides = array<i32>} : memref<8x4x4xf32, #tpu.memory_space<vmem>>, vector<8x1x4xf32>,
    return
  }
  func.func @transform_0(%arg0: i32) -> (i32, i32, i32) {
    %c0_i32 = arith.constant 0 : i32
    %c0_i32_0 = arith.constant 0 : i32
    %c0_i32_1 = arith.constant 0 : i32
    return %arg0, %c0_i32, %c0_i32_0 : i32, i32, i32
  }
  func.func @transform_1(%arg0: i32) -> (i32, i32, i32) {
    %c0_i32 = arith.constant 0 : i32
    %c0_i32_0 = arith.constant 0 : i32
    %c0_i32_1 = arith.constant 0 : i32
    return %arg0, %c0_i32, %c0_i32_0 : i32, i32, i32
  }
}

</mosaic_0001>

<bundles_post_ra>
// kernel: tpu_custom_call.1
= control target key start
LH: loop header
LB: loop body
LE: loop exit
PB: predicated region body
PF: predicated region fallthrough
CT: control target
= control target key end

     0   :  { %6 = vsyncpa [#allocation3], 0  ;;  %s831_s6 = smov [#allocation2]   ;;  %s1510_s0 = inlined_call_operand.hbm [shape: f32[8,16,16], index: 0, kind: input, shape index: {}]   ;;  %s1511_s1 = inlined_call_operand.vmem [shape: f32[8,4,4], index: 1, kind: output, shape index: {}]  }
   0x1   :  { %s12_s7 = sshll.u32 %s831_s6, 4  ;;  %s807_s10 = scalar_lea.hbm %s1510_s0, 2048  ;;  %s13_s7 = int_to_ptr.vmem [resolvable:$true] %s12_s7 }
   0x2   :  { %p808_p0 = scmp.ne.s32.totalorder %s1510_s0, %s807_s10  ;;  %p811_p1 = scmp.lt.u32.totalorder %s807_s10, %s1510_s0 }
   0x4   :  { %p813_p2 = pnand %p811_p1, %p808_p0 }
   0x6   :  { %816 = shalt.err (!%p813_p2)
}
   0x7   :  { %s817_s15 = scalar_lea.vmem %s13_s7, 2048  ;;  %p822_p4 = scmp.lt.s32.totalorder %s13_s7, %s13_s7 }
   0x8   :  { %p818_p3 = scmp.ne.s32.totalorder %s13_s7, %s817_s15  ;;  %p823_p5 = scmp.lt.s32.totalorder %s817_s15, %s817_s15 }
   0xa   :  { %p824_p6 = por %p823_p5, %p822_p4 }
   0xc   :  { %p825_p7 = pnand %p824_p6, %p818_p3 }
   0xe   :  { %828 = shalt.err (!%p825_p7)
}
   0xf   :  { %s832_s16 = smov 128   ;;  %s833_s17 = smov 8  }
  0x10   :  { %18 = dma.hbm_to_vmem [thread:$0]  %s1510_s0, 2048, %s13_s7, [#allocation3], %s832_s16, %s832_s16, %s833_s17  }
  0x11   :  { %829 = dma.done.wait [#allocation3], 2048  }
  0x12   :  { %830 = vsyncadd [#allocation3], 4294965248  ;;  %vm30_vm0 = vcmask 125952   ;;  %v24_v0 = vld [vmem:[#allocation2 + $0x20] sm:$0xf]  ;;  %vm87_vm1 = vcmask 31744  }
  0x13   :  { %v22_v1 = vld [vmem:[#allocation2] sm:$0xf]  ;;  %v25_v2 = vld [vmem:[#allocation2 + $0x30] sm:$0xf]  ;;  %v45_v3 = vsel %vm30_vm0, %v24_v0, -inf  ;;  %vm112_vm2 = vcmask 64544  }
  0x14   :  { %v31_v4 = vsel %vm30_vm0, %v22_v1, -inf  ;;  %v52_v5 = vsel %vm30_vm0, %v25_v2, -inf  ;;  %v23_v6 = vld [vmem:[#allocation2 + $0x10] sm:$0xf]  ;;  %v46_v7 = vrot.slane %v45_v3, 4  ;;  %vm137_vm3 = vcmask 97344  }
  0x15   :  { %v32_v8 = vrot.slane %v31_v4, 4  ;;  %v53_v9 = vrot.slane %v52_v5, 4  ;;  %v38_v10 = vsel %vm30_vm0, %v23_v6, -inf  ;;  %v27_v11 = vld [vmem:[#allocation2 + $0x50] sm:$0xf]  ;;  %vm162_vm4 = vcmask 130144  }
  0x16   :  { %v39_v12 = vrot.slane %v38_v10, 4  ;;  %v66_v13 = vsel %vm30_vm0, %v27_v11, -inf  ;;  %v26_v14 = vld [vmem:[#allocation2 + $0x40] sm:$0xf]  ;;  %v29_v15 = vld [vmem:[#allocation2 + $0x70] sm:$0xf]  ;;  %v47_v16 = vmax.f32 %v45_v3, %v46_v7 }
  0x17   :  { %v33_v17 = vmax.f32 %v31_v4, %v32_v8  ;;  %v54_v18 = vmax.f32 %v52_v5, %v53_v9  ;;  %v67_v19 = vrot.slane %v66_v13, 4  ;;  %v28_v20 = vld [vmem:[#allocation2 + $0x60] sm:$0xf]  ;;  %v59_v22 = vsel %vm30_vm0, %v26_v14, -inf }
  0x18   :  { %v40_v21 = vmax.f32 %v38_v10, %v39_v12  ;;  %v80_v23 = vsel %vm30_vm0, %v29_v15, -inf  ;;  %v73_v24 = vsel %vm30_vm0, %v28_v20, -inf  ;;  %v48_v25 = vrot.slane %v47_v16, 2 }
  0x19   :  { %v34_v26 = vrot.slane %v33_v17, 2  ;;  %v55_v27 = vrot.slane %v54_v18, 2  ;;  %v68_v28 = vmax.f32 %v66_v13, %v67_v19  ;;  %v60_v30 = vrot.slane %v59_v22, 4  ;;  %v223_v19 = vld [vmem:[#allocation2 + $0x4] sm:$0xf] }
  0x1a   :  { %v41_v29 = vrot.slane %v40_v21, 2  ;;  %v81_v31 = vrot.slane %v80_v23, 4  ;;  %v74_v32 = vrot.slane %v73_v24, 4  ;;  %v49_v33 = vmax.f32 %v47_v16, %v48_v25  ;;  %v225_v25 = vld [vmem:[#allocation2 + $0x24] sm:$0xf] }
  0x1b   :  { %v35_v34 = vmax.f32 %v33_v17, %v34_v26  ;;  %v56_v35 = vmax.f32 %v54_v18, %v55_v27  ;;  %v69_v36 = vrot.slane %v68_v28, 2  ;;  %v61_v38 = vmax.f32 %v59_v22, %v60_v30  ;;  %v224_v18 = vld [vmem:[#allocation2 + $0x14] sm:$0xf] }
  0x1c   :  { %v42_v37 = vmax.f32 %v40_v21, %v41_v29  ;;  %v82_v39 = vmax.f32 %v80_v23, %v81_v31  ;;  %v75_v40 = vmax.f32 %v73_v24, %v74_v32  ;;  %v50_v41 = vrot.slane %v49_v33, 1  ;;  %v226_v24 = vld [vmem:[#allocation2 + $0x34] sm:$0xf] }
  0x1d   :  { %v36_v42 = vrot.slane %v35_v34, 1  ;;  %v57_v43 = vrot.slane %v56_v35, 1  ;;  %v70_v44 = vmax.f32 %v68_v28, %v69_v36  ;;  %v62_v46 = vrot.slane %v61_v38, 2  ;;  %v228_v32 = vld [vmem:[#allocation2 + $0x54] sm:$0xf] }
  0x1e   :  { %v43_v45 = vrot.slane %v42_v37, 1  ;;  %v83_v47 = vrot.slane %v82_v39, 2  ;;  %v76_v48 = vrot.slane %v75_v40, 2  ;;  %v864_v49 = vmax.f32 %v49_v33, %v50_v41  ;;  %v227_v33 = vld [vmem:[#allocation2 + $0x44] sm:$0xf] }
  0x1f   :  { %v866_v50 = vmax.f32 %v35_v34, %v36_v42  ;;  %v868_v51 = vmax.f32 %v56_v35, %v57_v43  ;;  %v71_v52 = vrot.slane %v70_v44, 1  ;;  %v63_v54 = vmax.f32 %v61_v38, %v62_v46  ;;  %v230_v42 = vld [vmem:[#allocation2 + $0x74] sm:$0xf] }
  0x20   :  { %v870_v53 = vmax.f32 %v42_v37, %v43_v45  ;;  %v84_v55 = vmax.f32 %v82_v39, %v83_v47  ;;  %v77_v56 = vmax.f32 %v75_v40, %v76_v48  ;;  %v94_v57 = vsel %vm87_vm1, %v864_v49, -inf }
  0x21   :  { %v88_v58 = vsel %vm87_vm1, %v866_v50, -inf  ;;  %95 = vmax.xlane.f32.xlu1 %v94_v57  ;;  %v97_v59 = vsel %vm87_vm1, %v868_v51, -inf  ;;  %v64_v60 = vrot.slane %v63_v54, 1  ;;  %v880_v62 = vmax.f32 %v70_v44, %v71_v52  ;;  %v229_v44 = vld [vmem:[#allocation2 + $0x64] sm:$0xf] }
  0x22   :  { %89 = vmax.xlane.f32.xlu0 %v88_v58  ;;  %v91_v61 = vsel %vm87_vm1, %v870_v53, -inf  ;;  %v85_v63 = vrot.slane %v84_v55, 1  ;;  %v78_v0 = vrot.slane %v77_v56, 1  ;;  %v116_v8 = vsel %vm112_vm2, %v870_v53, -inf }
  0x23   :  { %v882_v1 = vmax.f32 %v63_v54, %v64_v60  ;;  %v103_v2 = vsel %vm87_vm1, %v880_v62, -inf  ;;  %v113_v9 = vsel %vm112_vm2, %v866_v50, -inf  ;;  %v122_v10 = vsel %vm112_vm2, %v868_v51, -inf }
  0x24   :  { %v888_v4 = vmax.f32 %v84_v55, %v85_v63  ;;  %v890_v5 = vmax.f32 %v77_v56, %v78_v0  ;;  %v119_v11 = vsel %vm112_vm2, %v864_v49, -inf  ;;  %v128_v12 = vsel %vm112_vm2, %v880_v62, -inf }
  0x25   :  { %98 = vmax.xlane.f32.xlu1 %v97_v59  ;;  %v100_v3 = vsel %vm87_vm1, %v882_v1, -inf  ;;  %v125_v13 = vsel %vm112_vm2, %v882_v1, -inf  ;;  %v141_v16 = vsel %vm137_vm3, %v870_v53, -inf  ;;  %v138_v17 = vsel %vm137_vm3, %v866_v50, -inf }
  0x26   :  { %92 = vmax.xlane.f32.xlu0 %v91_v61  ;;  %v109_v6 = vsel %vm87_vm1, %v888_v4, -inf  ;;  %v106_v7 = vsel %vm87_vm1, %v890_v5, -inf  ;;  %v134_v14 = vsel %vm112_vm2, %v888_v4, -inf  ;;  %v131_v15 = vsel %vm112_vm2, %v890_v5, -inf }
  0x27   :  { %v147_v20 = vsel %vm137_vm3, %v868_v51, -inf  ;;  %v144_v21 = vsel %vm137_vm3, %v864_v49, -inf  ;;  %v238_v22 = vsel %vm30_vm0, %v224_v18, -inf  ;;  %v231_v23 = vsel %vm30_vm0, %v223_v19, -inf }
  0x28   :  { %v153_v26 = vsel %vm137_vm3, %v880_v62, -inf  ;;  %v150_v27 = vsel %vm137_vm3, %v882_v1, -inf  ;;  %v239_v28 = vrot.slane %v238_v22, 4  ;;  %v232_v29 = vrot.slane %v231_v23, 4 }
  0x29   :  { %104 = vmax.xlane.f32.xlu1 %v103_v2  ;;  %v252_v30 = vsel %vm30_vm0, %v226_v24, -inf  ;;  %v245_v31 = vsel %vm30_vm0, %v225_v25, -inf  ;;  %v159_v34 = vsel %vm137_vm3, %v888_v4, -inf  ;;  %v156_v37 = vsel %vm137_vm3, %v890_v5, -inf }
  0x2a   :  { %101 = vmax.xlane.f32.xlu0 %v100_v3  ;;  %v253_v35 = vrot.slane %v252_v30, 4  ;;  %v246_v36 = vrot.slane %v245_v31, 4  ;;  %v240_v38 = vmax.f32 %v238_v22, %v239_v28  ;;  %v233_v39 = vmax.f32 %v231_v23, %v232_v29 }
  0x2b   :  { %v266_v40 = vsel %vm30_vm0, %v228_v32, -inf  ;;  %v259_v41 = vsel %vm30_vm0, %v227_v33, -inf  ;;  %v166_v43 = vsel %vm162_vm4, %v870_v53, -inf  ;;  %v163_v45 = vsel %vm162_vm4, %v866_v50, -inf }
  0x2c   :  { %v254_v46 = vmax.f32 %v252_v30, %v253_v35  ;;  %v247_v47 = vmax.f32 %v245_v31, %v246_v36  ;;  %v267_v48 = vrot.slane %v266_v40, 4  ;;  %v241_v52 = vrot.slane %v240_v38, 2 }
  0x2d   :  { %110 = vmax.xlane.f32.xlu1 %v109_v6  ;;  %v234_v54 = vrot.slane %v233_v39, 2  ;;  %v260_v55 = vrot.slane %v259_v41, 4  ;;  %v280_v56 = vsel %vm30_vm0, %v230_v42, -inf  ;;  %v273_v57 = vsel %vm30_vm0, %v229_v44, -inf }
  0x2e   :  { %107 = vmax.xlane.f32.xlu0 %v106_v7  ;;  %v172_v58 = vsel %vm162_vm4, %v868_v51, -inf  ;;  %v169_v53 = vsel %vm162_vm4, %v864_v49, -inf  ;;  %v255_v59 = vrot.slane %v254_v46, 2  ;;  %v248_v50 = vrot.slane %v247_v47, 2 }
  0x2f   :  { %v268_v60 = vmax.f32 %v266_v40, %v267_v48  ;;  %v281_v61 = vrot.slane %v280_v56, 4  ;;  %v242_v63 = vmax.f32 %v240_v38, %v241_v52  ;;  %v235_v0 = vmax.f32 %v233_v39, %v234_v54  ;;  %v416_v54 = vld [vmem:[#allocation2 + $0x18] sm:$0xf] }
  0x30   :  { %v261_v2 = vmax.f32 %v259_v41, %v260_v55  ;;  %v274_v3 = vrot.slane %v273_v57, 4  ;;  %v178_v6 = vsel %vm162_vm4, %v880_v62, -inf  ;;  %v175_v7 = vsel %vm162_vm4, %v882_v1, -inf  ;;  %v415_v55 = vld [vmem:[#allocation2 + $0x8] sm:$0xf] }
  0x31   :  { %117 = vmax.xlane.f32.xlu1 %v116_v8  ;;  %v256_v51 = vmax.f32 %v254_v46, %v255_v59  ;;  %v249_v49 = vmax.f32 %v247_v47, %v248_v50  ;;  %v269_v8 = vrot.slane %v268_v60, 2  ;;  %v418_v59 = vld [vmem:[#allocation2 + $0x38] sm:$0xf]  ;;  %v417_v50 = vld [vmem:[#allocation2 + $0x28] sm:$0xf]  ;;  %vm187_vm5 = vcmask 7168  }
  0x32   :  { %114 = vmax.xlane.f32.xlu0 %v113_v9  ;;  %v282_v9 = vmax.f32 %v280_v56, %v281_v61  ;;  %vm196_vm6 = vcmask 15360   ;;  %vm205_vm7 = vcmask 23552   ;;  %vm214_vm8 = vcmask 24576  }
  0x33   :  { %v257_v62 = vrot.slane %v256_v51, 1  ;;  %v250_v1 = vrot.slane %v249_v49, 1 }
  0x35   :  { %123 = vmax.xlane.f32.xlu1 %v122_v10  ;;  %v243_v10 = vrot.slane %v242_v63, 1  ;;  %v956_v22 = vmax.f32 %v256_v51, %v257_v62  ;;  %v421_v62 = vld [vmem:[#allocation2 + $0x68] sm:$0xf] }
  0x36   :  { %120 = vmax.xlane.f32.xlu0 %v119_v11  ;;  %v236_v11 = vrot.slane %v235_v0, 1 }
  0x37   :  { %v952_v18 = vmax.f32 %v242_v63, %v243_v10  ;;  %v296_v30 = vsel %vm87_vm1, %v956_v22, -inf  ;;  %v320_v42 = vsel %vm112_vm2, %v956_v22, -inf  ;;  %v344_v56 = vsel %vm137_vm3, %v956_v22, -inf }
  0x38   :  { %v954_v19 = vmax.f32 %v235_v0, %v236_v11 }
  0x39   :  { %129 = vmax.xlane.f32.xlu1 %v128_v12  ;;  %v262_v12 = vrot.slane %v261_v2, 2  ;;  %v290_v24 = vsel %vm87_vm1, %v952_v18, -inf  ;;  %v314_v40 = vsel %vm112_vm2, %v952_v18, -inf  ;;  %v338_v48 = vsel %vm137_vm3, %v952_v18, -inf }
  0x3a   :  { %126 = vmax.xlane.f32.xlu0 %v125_v13  ;;  %v275_v13 = vmax.f32 %v273_v57, %v274_v3  ;;  %v287_v25 = vsel %vm87_vm1, %v954_v19, -inf  ;;  %v311_v41 = vsel %vm112_vm2, %v954_v19, -inf  ;;  %v335_v52 = vsel %vm137_vm3, %v954_v19, -inf }
  0x3b   :  { %v437_v3 = vsel %vm30_vm0, %v417_v50, -inf }
  0x3d   :  { %135 = vmax.xlane.f32.xlu1 %v134_v14  ;;  %v184_v14 = vsel %vm162_vm4, %v888_v4, -inf  ;;  %v958_v4 = vmax.f32 %v249_v49, %v250_v1  ;;  %v359_v1 = vsel %vm162_vm4, %v954_v19, -inf }
  0x3e   :  { %132 = vmax.xlane.f32.xlu0 %v131_v15  ;;  %v181_v15 = vsel %vm162_vm4, %v890_v5, -inf }
  0x3f   :  { %v293_v31 = vsel %vm87_vm1, %v958_v4, -inf  ;;  %v341_v57 = vsel %vm137_vm3, %v958_v4, -inf }
  0x41   :  { %142 = vmax.xlane.f32.xlu1 %v141_v16  ;;  %v270_v16 = vmax.f32 %v268_v60, %v269_v8  ;;  %v438_v8 = vrot.slane %v437_v3, 4 }
  0x42   :  { %139 = vmax.xlane.f32.xlu0 %v138_v17  ;;  %v283_v17 = vrot.slane %v282_v9, 2 }
  0x43   :  { %v271_v23 = vrot.slane %v270_v16, 1 }
  0x44   :  { %v284_v5 = vmax.f32 %v282_v9, %v283_v17  ;;  %v439_v17 = vmax.f32 %v437_v3, %v438_v8 }
  0x45   :  { %148 = vmax.xlane.f32.xlu1 %v147_v20  ;;  %v263_v20 = vmax.f32 %v261_v2, %v262_v12  ;;  %v964_v28 = vmax.f32 %v270_v16, %v271_v23  ;;  %v444_v2 = vsel %vm30_vm0, %v418_v59, -inf }
  0x46   :  { %145 = vmax.xlane.f32.xlu0 %v144_v21  ;;  %v276_v21 = vrot.slane %v275_v13, 2  ;;  %v285_v29 = vrot.slane %v284_v5, 1  ;;  %v445_v49 = vrot.slane %v444_v2, 4  ;;  %v440_v19 = vrot.slane %v439_v17, 2 }
  0x47   :  { %v326_v44 = vsel %vm112_vm2, %v964_v28, -inf  ;;  %v350_v60 = vsel %vm137_vm3, %v964_v28, -inf }
  0x48   :  { %v976_v36 = vmax.f32 %v284_v5, %v285_v29  ;;  %v446_v16 = vmax.f32 %v444_v2, %v445_v49 }
  0x49   :  { %154 = vmax.xlane.f32.xlu1 %v153_v26  ;;  %v264_v26 = vrot.slane %v263_v20, 1 }
  0x4a   :  { %151 = vmax.xlane.f32.xlu0 %v150_v27  ;;  %v277_v27 = vmax.f32 %v275_v13, %v276_v21  ;;  %v308_v38 = vsel %vm87_vm1, %v976_v36, -inf  ;;  %v332_v46 = vsel %vm112_vm2, %v976_v36, -inf  ;;  %v356_v51 = vsel %vm137_vm3, %v976_v36, -inf }
  0x4b   :  { %v970_v32 = vmax.f32 %v263_v20, %v264_v26  ;;  %v368_v26 = vsel %vm162_vm4, %v956_v22, -inf }
  0x4c   :  { %v278_v33 = vrot.slane %v277_v27, 1 }
  0x4d   :  { %160 = vmax.xlane.f32.xlu1 %v159_v34  ;;  %v302_v34 = vsel %vm87_vm1, %v964_v28, -inf  ;;  %v299_v35 = vsel %vm87_vm1, %v970_v32, -inf  ;;  %v347_v61 = vsel %vm137_vm3, %v970_v32, -inf }
  0x4e   :  { %157 = vmax.xlane.f32.xlu0 %v156_v37  ;;  %v978_v37 = vmax.f32 %v277_v27, %v278_v33  ;;  %v447_v27 = vrot.slane %v446_v16, 2 }
  0x50   :  { %v305_v39 = vsel %vm87_vm1, %v978_v37, -inf  ;;  %v329_v47 = vsel %vm112_vm2, %v978_v37, -inf  ;;  %v353_v9 = vsel %vm137_vm3, %v978_v37, -inf  ;;  %v448_v22 = vmax.f32 %v446_v16, %v447_v27 }
  0x51   :  { %167 = vmax.xlane.f32.xlu1 %v166_v43  ;;  %v317_v43 = vsel %vm112_vm2, %v958_v4, -inf }
  0x52   :  { %164 = vmax.xlane.f32.xlu0 %v163_v45  ;;  %v323_v45 = vsel %vm112_vm2, %v970_v32, -inf }
  0x55   :  { %173 = vmax.xlane.f32.xlu1 %v172_v58  ;;  %v430_v58 = vsel %vm30_vm0, %v416_v54, -inf }
  0x56   :  { %170 = vmax.xlane.f32.xlu0 %v169_v53  ;;  %v423_v53 = vsel %vm30_vm0, %v415_v55, -inf  ;;  %v431_v63 = vrot.slane %v430_v58, 4 }
  0x57   :  { %v424_v0 = vrot.slane %v423_v53, 4 }
  0x58   :  { %v432_v10 = vmax.f32 %v430_v58, %v431_v63 }
  0x59   :  { %179 = vmax.xlane.f32.xlu1 %v178_v6  ;;  %v420_v6 = vld [vmem:[#allocation2 + $0x58] sm:$0xf]  ;;  %v425_v11 = vmax.f32 %v423_v53, %v424_v0 }
  0x5a   :  { %176 = vmax.xlane.f32.xlu0 %v175_v7  ;;  %v419_v7 = vld [vmem:[#allocation2 + $0x48] sm:$0xf]  ;;  %v458_v12 = vsel %vm30_vm0, %v420_v6, -inf  ;;  %v433_v21 = vrot.slane %v432_v10, 2 }
  0x5b   :  { %v451_v13 = vsel %vm30_vm0, %v419_v7, -inf  ;;  %v459_v20 = vrot.slane %v458_v12, 4  ;;  %v426_v23 = vrot.slane %v425_v11, 2 }
  0x5c   :  { %v452_v5 = vrot.slane %v451_v13, 4 }
  0x5d   :  { %185 = vmax.xlane.f32.xlu1 %v184_v14  ;;  %v422_v14 = vld [vmem:[#allocation2 + $0x78] sm:$0xf]  ;;  %v460_v29 = vmax.f32 %v458_v12, %v459_v20  ;;  %v427_v33 = vmax.f32 %v425_v11, %v426_v23  ;;  %v607_v20 = vld [vmem:[#allocation2 + $0xc] sm:$0xf] }
  0x5e   :  { %182 = vmax.xlane.f32.xlu0 %v181_v15  ;;  %v362_v15 = vsel %vm162_vm4, %v952_v18, -inf  ;;  %v365_v18 = vsel %vm162_vm4, %v958_v4, -inf  ;;  %v441_v4 = vmax.f32 %v439_v17, %v440_v19 }
  0x61   :  { %291 = vmax.xlane.f32.xlu1 %v290_v24  ;;  %v472_v24 = vsel %vm30_vm0, %v422_v14, -inf }
  0x62   :  { %288 = vmax.xlane.f32.xlu0 %v287_v25  ;;  %v465_v25 = vsel %vm30_vm0, %v421_v62, -inf }
  0x65   :  { %297 = vmax.xlane.f32.xlu1 %v296_v30  ;;  %v473_v30 = vrot.slane %v472_v24, 4 }
  0x66   :  { %294 = vmax.xlane.f32.xlu0 %v293_v31  ;;  %v434_v31 = vmax.f32 %v432_v10, %v433_v21 }
  0x69   :  { %303 = vmax.xlane.f32.xlu1 %v302_v34  ;;  %v453_v34 = vmax.f32 %v451_v13, %v452_v5 }
  0x6a   :  { %300 = vmax.xlane.f32.xlu0 %v299_v35  ;;  %v466_v35 = vrot.slane %v465_v25, 4 }
  0x6d   :  { %309 = vmax.xlane.f32.xlu1 %v308_v38  ;;  %v374_v38 = vsel %vm162_vm4, %v964_v28, -inf  ;;  %v449_v28 = vrot.slane %v448_v22, 1 }
  0x6e   :  { %306 = vmax.xlane.f32.xlu0 %v305_v39  ;;  %v371_v39 = vsel %vm162_vm4, %v970_v32, -inf  ;;  %v442_v32 = vrot.slane %v441_v4, 1 }
  0x6f   :  { %v1044_v58 = vmax.f32 %v448_v22, %v449_v28 }
  0x71   :  { %315 = vmax.xlane.f32.xlu1 %v314_v40  ;;  %v461_v40 = vrot.slane %v460_v29, 2  ;;  %v488_v2 = vsel %vm87_vm1, %v1044_v58, -inf  ;;  %v512_v16 = vsel %vm112_vm2, %v1044_v58, -inf  ;;  %v536_v28 = vsel %vm137_vm3, %v1044_v58, -inf }
  0x72   :  { %312 = vmax.xlane.f32.xlu0 %v311_v41  ;;  %v474_v41 = vmax.f32 %v472_v24, %v473_v30 }
  0x75   :  { %321 = vmax.xlane.f32.xlu1 %v320_v42  ;;  %v435_v42 = vrot.slane %v434_v31, 1 }
  0x76   :  { %318 = vmax.xlane.f32.xlu0 %v317_v43  ;;  %v428_v43 = vrot.slane %v427_v33, 1 }
  0x77   :  { %v1040_v54 = vmax.f32 %v434_v31, %v435_v42 }
  0x78   :  { %v1042_v55 = vmax.f32 %v427_v33, %v428_v43 }
  0x79   :  { %327 = vmax.xlane.f32.xlu1 %v326_v44  ;;  %v454_v44 = vrot.slane %v453_v34, 2  ;;  %v482_v59 = vsel %vm87_vm1, %v1040_v54, -inf  ;;  %v506_v14 = vsel %vm112_vm2, %v1040_v54, -inf }
  0x7a   :  { %324 = vmax.xlane.f32.xlu0 %v323_v45  ;;  %v467_v45 = vmax.f32 %v465_v25, %v466_v35  ;;  %v479_v50 = vsel %vm87_vm1, %v1042_v55, -inf  ;;  %v615_v25 = vsel %vm30_vm0, %v607_v20, -inf  ;;  %v611_v35 = vld [vmem:[#allocation2 + $0x4c] sm:$0xf]  ;;  %v527_v22 = vsel %vm137_vm3, %v1042_v55, -inf }
  0x7b   :  { %v616_v31 = vrot.slane %v615_v25, 4 }
  0x7d   :  { %333 = vmax.xlane.f32.xlu1 %v332_v46  ;;  %v380_v46 = vsel %vm162_vm4, %v976_v36, -inf  ;;  %v1046_v36 = vmax.f32 %v441_v4, %v442_v32  ;;  %v617_v42 = vmax.f32 %v615_v25, %v616_v31 }
  0x7e   :  { %330 = vmax.xlane.f32.xlu0 %v329_v47  ;;  %v377_v47 = vsel %vm162_vm4, %v978_v37, -inf }
  0x7f   :  { %v485_v3 = vsel %vm87_vm1, %v1046_v36, -inf  ;;  %v509_v17 = vsel %vm112_vm2, %v1046_v36, -inf }
  0x81   :  { %339 = vmax.xlane.f32.xlu1 %v338_v48  ;;  %v462_v48 = vmax.f32 %v460_v29, %v461_v40 }
  0x82   :  { %336 = vmax.xlane.f32.xlu0 %v335_v52  ;;  %v475_v52 = vrot.slane %v474_v41, 2 }
  0x83   :  { %v463_v53 = vrot.slane %v462_v48, 1 }
  0x84   :  { %v476_v37 = vmax.f32 %v474_v41, %v475_v52 }
  0x85   :  { %345 = vmax.xlane.f32.xlu1 %v344_v56  ;;  %v455_v56 = vmax.f32 %v453_v34, %v454_v44  ;;  %v1052_v63 = vmax.f32 %v462_v48, %v463_v53  ;;  %v643_v44 = vsel %vm30_vm0, %v611_v35, -inf  ;;  %v533_v53 = vsel %vm137_vm3, %v1046_v36, -inf }
  0x86   :  { %342 = vmax.xlane.f32.xlu0 %v341_v57  ;;  %v468_v57 = vrot.slane %v467_v45, 2  ;;  %v477_v0 = vrot.slane %v476_v37, 1  ;;  %v644_v48 = vrot.slane %v643_v44, 4 }
  0x87   :  { %v518_v5 = vsel %vm112_vm2, %v1052_v63, -inf }
  0x88   :  { %v1064_v8 = vmax.f32 %v476_v37, %v477_v0  ;;  %v618_v37 = vrot.slane %v617_v42, 2  ;;  %v614_v0 = vld [vmem:[#allocation2 + $0x7c] sm:$0xf] }
  0x89   :  { %351 = vmax.xlane.f32.xlu1 %v350_v60  ;;  %v456_v60 = vrot.slane %v455_v56, 1 }
  0x8a   :  { %348 = vmax.xlane.f32.xlu0 %v347_v61  ;;  %v469_v61 = vmax.f32 %v467_v45, %v468_v57  ;;  %v500_v10 = vsel %vm87_vm1, %v1064_v8, -inf  ;;  %v524_v29 = vsel %vm112_vm2, %v1064_v8, -inf  ;;  %v548_v20 = vsel %vm137_vm3, %v1064_v8, -inf }
  0x8b   :  { %v1058_v6 = vmax.f32 %v455_v56, %v456_v60 }
  0x8c   :  { %v470_v7 = vrot.slane %v469_v61, 1 }
  0x8d   :  { %357 = vmax.xlane.f32.xlu1 %v356_v51  ;;  %v494_v51 = vsel %vm87_vm1, %v1052_v63, -inf  ;;  %v491_v49 = vsel %vm87_vm1, %v1058_v6, -inf  ;;  %v515_v24 = vsel %vm112_vm2, %v1058_v6, -inf }
  0x8e   :  { %354 = vmax.xlane.f32.xlu0 %v353_v9  ;;  %v1066_v9 = vmax.f32 %v469_v61, %v470_v7  ;;  %v542_v61 = vsel %vm137_vm3, %v1052_v63, -inf }
  0x90   :  { %v497_v11 = vsel %vm87_vm1, %v1066_v9, -inf  ;;  %v521_v30 = vsel %vm112_vm2, %v1066_v9, -inf }
  0x91   :  { %363 = vmax.xlane.f32.xlu1 %v362_v15  ;;  %v503_v15 = vsel %vm112_vm2, %v1042_v55, -inf }
  0x92   :  { %360 = vmax.xlane.f32.xlu0 %v359_v1 }
  0x95   :  { %369 = vmax.xlane.f32.xlu1 %v368_v26  ;;  %v609_v26 = vld [vmem:[#allocation2 + $0x2c] sm:$0xf] }
  0x96   :  { %366 = vmax.xlane.f32.xlu0 %v365_v18  ;;  %v608_v18 = vld [vmem:[#allocation2 + $0x1c] sm:$0xf]  ;;  %v629_v33 = vsel %vm30_vm0, %v609_v26, -inf }
  0x97   :  { %v622_v34 = vsel %vm30_vm0, %v608_v18, -inf  ;;  %v630_v4 = vrot.slane %v629_v33, 4 }
  0x98   :  { %v623_v43 = vrot.slane %v622_v34, 4 }
  0x99   :  { %375 = vmax.xlane.f32.xlu1 %v374_v38  ;;  %v610_v38 = vld [vmem:[#allocation2 + $0x3c] sm:$0xf]  ;;  %v631_v32 = vmax.f32 %v629_v33, %v630_v4 }
  0x9a   :  { %372 = vmax.xlane.f32.xlu0 %v371_v39  ;;  %v530_v39 = vsel %vm137_vm3, %v1040_v54, -inf  ;;  %v636_v45 = vsel %vm30_vm0, %v610_v38, -inf  ;;  %v554_v38 = vsel %vm162_vm4, %v1040_v54, -inf }
  0x9b   :  { %v637_v52 = vrot.slane %v636_v45, 4 }
  0x9d   :  { %381 = vmax.xlane.f32.xlu1 %v380_v46  ;;  %v613_v46 = vld [vmem:[#allocation2 + $0x6c] sm:$0xf]  ;;  %v638_v7 = vmax.f32 %v636_v45, %v637_v52 }
  0x9e   :  { %378 = vmax.xlane.f32.xlu0 %v377_v47  ;;  %v612_v47 = vld [vmem:[#allocation2 + $0x5c] sm:$0xf] }
  0x9f   :  { %v650_v60 = vsel %vm30_vm0, %v612_v47, -inf  ;;  %v639_v26 = vrot.slane %v638_v7, 2 }
  0xa1   :  { %483 = vmax.xlane.f32.xlu1 %v482_v59  ;;  %v624_v59 = vmax.f32 %v622_v34, %v623_v43 }
  0xa2   :  { %480 = vmax.xlane.f32.xlu0 %v479_v50  ;;  %v657_v50 = vsel %vm30_vm0, %v613_v46, -inf }
  0xa5   :  { %489 = vmax.xlane.f32.xlu1 %v488_v2  ;;  %v632_v2 = vrot.slane %v631_v32, 2 }
  0xa6   :  { %486 = vmax.xlane.f32.xlu0 %v485_v3  ;;  %v645_v3 = vmax.f32 %v643_v44, %v644_v48  ;;  %v557_v48 = vsel %vm162_vm4, %v1046_v36, -inf }
  0xa8   :  { %v646_v25 = vrot.slane %v645_v3, 2 }
  0xa9   :  { %495 = vmax.xlane.f32.xlu1 %v494_v51  ;;  %v658_v51 = vrot.slane %v657_v50, 4 }
  0xaa   :  { %492 = vmax.xlane.f32.xlu0 %v491_v49  ;;  %v647_v4 = vmax.f32 %v645_v3, %v646_v25 }
  0xab   :  { %v659_v18 = vmax.f32 %v657_v50, %v658_v51 }
  0xad   :  { %501 = vmax.xlane.f32.xlu1 %v500_v10  ;;  %v660_v43 = vrot.slane %v659_v18, 2 }
  0xae   :  { %498 = vmax.xlane.f32.xlu0 %v497_v11  ;;  %v1072_v12 = vpop.xlane.xlu1 %95  ;;  %v539_v11 = vsel %vm137_vm3, %v1058_v6, -inf }
  0xaf   :  { %v1074_v13 = vpop.xlane.xlu0 %89 }
  0xb1   :  { %507 = vmax.xlane.f32.xlu1 %v506_v14  ;;  %v619_v14 = vmax.f32 %v617_v42, %v618_v37  ;;  %v640_v42 = vmax.f32 %v638_v7, %v639_v26 }
  0xb2   :  { %504 = vmax.xlane.f32.xlu0 %v503_v15  ;;  %v1080_v62 = vpop.xlane.xlu1 %98  ;;  %v625_v15 = vrot.slane %v624_v59, 2 }
  0xb3   :  { %v1082_v1 = vpop.xlane.xlu0 %92  ;;  %v620_v31 = vrot.slane %v619_v14, 1  ;;  %v641_v52 = vrot.slane %v640_v42, 1 }
  0xb4   :  { %v626_v33 = vmax.f32 %v624_v59, %v625_v15 }
  0xb5   :  { %513 = vmax.xlane.f32.xlu1 %v512_v16  ;;  %v651_v16 = vrot.slane %v650_v60, 4  ;;  %v1148_v46 = vmax.f32 %v619_v14, %v620_v31  ;;  %v1160_v36 = vmax.f32 %v640_v42, %v641_v52 }
  0xb6   :  { %510 = vmax.xlane.f32.xlu0 %v509_v17  ;;  %v1088_v21 = vpop.xlane.xlu1 %104  ;;  %v664_v17 = vsel %vm30_vm0, %v614_v0, -inf  ;;  %v627_v47 = vrot.slane %v626_v33, 1 }
  0xb7   :  { %v1090_v23 = vpop.xlane.xlu0 %101  ;;  %v652_v34 = vmax.f32 %v650_v60, %v651_v16  ;;  %v665_v35 = vrot.slane %v664_v17, 4  ;;  %v671_v50 = vsel %vm87_vm1, %v1148_v46, -inf  ;;  %v680_v25 = vsel %vm87_vm1, %v1160_v36, -inf }
  0xb8   :  { %v1156_v60 = vmax.f32 %v626_v33, %v627_v47 }
  0xb9   :  { %519 = vmax.xlane.f32.xlu1 %v518_v5  ;;  %v545_v5 = vsel %vm137_vm3, %v1066_v9, -inf }
  0xba   :  { %516 = vmax.xlane.f32.xlu0 %v515_v24  ;;  %v1097_v27 = vpop.xlane.xlu1 %110  ;;  %v633_v24 = vmax.f32 %v631_v32, %v632_v2  ;;  %v666_v32 = vmax.f32 %v664_v17, %v665_v35  ;;  %v674_v14 = vsel %vm87_vm1, %v1156_v60, -inf }
  0xbb   :  { %v1099_v19 = vpop.xlane.xlu0 %107 }
  0xbc   :  { %v667_v0 = vrot.slane %v666_v32, 2 }
  0xbd   :  { %525 = vmax.xlane.f32.xlu1 %v524_v29 }
  0xbe   :  { %522 = vmax.xlane.f32.xlu0 %v521_v30  ;;  %v1111_v40 = vpop.xlane.xlu1 %117  ;;  %v668_v16 = vmax.f32 %v666_v32, %v667_v0 }
  0xbf   :  { %v1113_v41 = vpop.xlane.xlu0 %114  ;;  %v189_v31 = vsel %vm187_vm5, %v1082_v1, %v1111_v40 }
  0xc0   :  { %v188_v33 = vsel %vm187_vm5, %v1074_v13, %v1113_v41 }
  0xc1   :  { %531 = vmax.xlane.f32.xlu1 %v530_v39  ;;  %v551_v39 = vsel %vm162_vm4, %v1042_v55, -inf  ;;  %v648_v55 = vrot.slane %v647_v4, 1 }
  0xc2   :  { %528 = vmax.xlane.f32.xlu0 %v527_v22  ;;  %v1119_v56 = vpop.xlane.xlu1 %123  ;;  %v634_v22 = vrot.slane %v633_v24, 1 }
  0xc3   :  { %v1121_v57 = vpop.xlane.xlu0 %120  ;;  %v1158_v2 = vmax.f32 %v647_v4, %v648_v55  ;;  %v191_v41 = vsel %vm187_vm5, %v1080_v62, %v1119_v56 }
  0xc4   :  { %v1152_v54 = vmax.f32 %v633_v24, %v634_v22  ;;  %v190_v42 = vsel %vm187_vm5, %v1072_v12, %v1121_v57 }
  0xc5   :  { %537 = vmax.xlane.f32.xlu1 %v536_v28  ;;  %v653_v28 = vrot.slane %v652_v34, 2  ;;  %v683_v24 = vsel %vm87_vm1, %v1158_v2, -inf }
  0xc6   :  { %534 = vmax.xlane.f32.xlu0 %v533_v53  ;;  %v1129_v49 = vpop.xlane.xlu1 %129  ;;  %v661_v53 = vmax.f32 %v659_v18, %v660_v43  ;;  %v669_v18 = vrot.slane %v668_v16, 1 }
  0xc7   :  { %v1131_v10 = vpop.xlane.xlu0 %126  ;;  %v193_v12 = vsel %vm187_vm5, %v1088_v21, %v1129_v49 }
  0xc8   :  { %v662_v3 = vrot.slane %v661_v53, 1  ;;  %v1186_v1 = vmax.f32 %v668_v16, %v669_v18  ;;  %v192_v57 = vsel %vm187_vm5, %v1090_v23, %v1131_v10  ;;  %v725_v18 = vsel %vm137_vm3, %v1152_v54, -inf }
  0xc9   :  { %543 = vmax.xlane.f32.xlu1 %v542_v61  ;;  %v654_v61 = vmax.f32 %v652_v34, %v653_v28  ;;  %v695_v28 = vsel %vm112_vm2, %v1148_v46, -inf }
  0xca   :  { %540 = vmax.xlane.f32.xlu0 %v539_v11  ;;  %v1140_v29 = vpop.xlane.xlu1 %135  ;;  %v677_v11 = vsel %vm87_vm1, %v1152_v54, -inf  ;;  %v1166_v17 = vmax.f32 %v661_v53, %v662_v3  ;;  %v692_v32 = vsel %vm87_vm1, %v1186_v1, -inf }
  0xcb   :  { %v1142_v30 = vpop.xlane.xlu0 %132  ;;  %v655_v15 = vrot.slane %v654_v61, 1  ;;  %v195_v23 = vsel %vm187_vm5, %v1097_v27, %v1140_v29 }
  0xcc   :  { %v689_v34 = vsel %vm87_vm1, %v1166_v17, -inf  ;;  %v194_v10 = vsel %vm187_vm5, %v1099_v19, %v1142_v30 }
  0xcd   :  { %549 = vmax.xlane.f32.xlu1 %v548_v20  ;;  %v1172_v26 = vmax.f32 %v654_v61, %v655_v15 }
  0xce   :  { %546 = vmax.xlane.f32.xlu0 %v545_v5  ;;  %v143_v44 = vpop.xlane.xlu1 %142 }
  0xcf   :  { %v140_v45 = vpop.xlane.xlu0 %139  ;;  %v198_v35 = vsel %vm196_vm6, %v189_v31, %v143_v44  ;;  %v686_v4 = vsel %vm87_vm1, %v1172_v26, -inf  ;;  %v722_v31 = vsel %vm137_vm3, %v1156_v60, -inf }
  0xd1   :  { %555 = vmax.xlane.f32.xlu1 %v554_v38  ;;  %v197_v38 = vsel %vm196_vm6, %v188_v33, %v140_v45 }
  0xd2   :  { %552 = vmax.xlane.f32.xlu0 %v551_v39  ;;  %v149_v37 = vpop.xlane.xlu1 %148 }
  0xd3   :  { %v146_v59 = vpop.xlane.xlu0 %145  ;;  %v200_v43 = vsel %vm196_vm6, %v191_v41, %v149_v37  ;;  %v701_v37 = vsel %vm112_vm2, %v1152_v54, -inf }
  0xd4   :  { %v199_v44 = vsel %vm196_vm6, %v190_v42, %v146_v59  ;;  %v698_v59 = vsel %vm112_vm2, %v1156_v60, -inf  ;;  %v560_v42 = vsel %vm162_vm4, %v1044_v58, -inf  ;;  %v572_v58 = vsel %vm162_vm4, %v1064_v8, -inf }
  0xd5   :  { %672 = vmax.xlane.f32.xlu1 %v671_v50  ;;  %v752_v8 = vsel %vm162_vm4, %v1160_v36, -inf }
  0xd6   :  { %558 = vmax.xlane.f32.xlu0 %v557_v48  ;;  %v155_v7 = vpop.xlane.xlu1 %154 }
  0xd7   :  { %v152_v51 = vpop.xlane.xlu0 %151  ;;  %v202_v48 = vsel %vm196_vm6, %v193_v12, %v155_v7  ;;  %v707_v7 = vsel %vm112_vm2, %v1158_v2, -inf }
  0xd8   :  { %v201_v55 = vsel %vm196_vm6, %v192_v57, %v152_v51  ;;  %v704_v51 = vsel %vm112_vm2, %v1160_v36, -inf }
  0xd9   :  { %678 = vmax.xlane.f32.xlu1 %v677_v11  ;;  %v713_v11 = vsel %vm112_vm2, %v1166_v17, -inf }
  0xda   :  { %675 = vmax.xlane.f32.xlu0 %v674_v14  ;;  %v161_v20 = vpop.xlane.xlu1 %160  ;;  %v710_v14 = vsel %vm112_vm2, %v1172_v26, -inf }
  0xdb   :  { %v158_v5 = vpop.xlane.xlu0 %157  ;;  %v204_v50 = vsel %vm196_vm6, %v195_v23, %v161_v20  ;;  %v719_v20 = vsel %vm137_vm3, %v1148_v46, -inf }
  0xdc   :  { %v203_v61 = vsel %vm196_vm6, %v194_v10, %v158_v5  ;;  %v716_v5 = vsel %vm112_vm2, %v1186_v1, -inf }
  0xdd   :  { %684 = vmax.xlane.f32.xlu1 %v683_v24 }
  0xde   :  { %681 = vmax.xlane.f32.xlu0 %v680_v25  ;;  %v168_v39 = vpop.xlane.xlu1 %167 }
  0xdf   :  { %v165_v22 = vpop.xlane.xlu0 %164  ;;  %v207_v40 = vsel %vm205_vm7, %v198_v35, %v168_v39  ;;  %v731_v35 = vsel %vm137_vm3, %v1158_v2, -inf }
  0xe0   :  { %v206_v13 = vsel %vm205_vm7, %v197_v38, %v165_v22  ;;  %216 = vst.msk [vmem:[%s1511_s1 + $0x4] sm:$0x1] %vm214_vm8, %v207_v40  ;;  %v728_v38 = vsel %vm137_vm3, %v1160_v36, -inf  ;;  %v734_v40 = vsel %vm137_vm3, %v1172_v26, -inf  ;;  %v764_v36 = vsel %vm162_vm4, %v1186_v1, -inf }
  0xe1   :  { %215 = vst.msk [vmem:[%s1511_s1] sm:$0x1] %vm214_vm8, %v206_v13  ;;  %690 = vmax.xlane.f32.xlu1 %v689_v34 }
  0xe2   :  { %687 = vmax.xlane.f32.xlu0 %v686_v4  ;;  %v174_v45 = vpop.xlane.xlu1 %173  ;;  %v737_v4 = vsel %vm137_vm3, %v1166_v17, -inf }
  0xe3   :  { %v171_v47 = vpop.xlane.xlu0 %170  ;;  %v209_v62 = vsel %vm205_vm7, %v200_v43, %v174_v45  ;;  %v740_v43 = vsel %vm137_vm3, %v1186_v1, -inf }
  0xe4   :  { %v208_v56 = vsel %vm205_vm7, %v199_v44, %v171_v47  ;;  %218 = vst.msk [vmem:[%s1511_s1 + $0xc] sm:$0x1] %vm214_vm8, %v209_v62  ;;  %v566_v47 = vsel %vm162_vm4, %v1052_v63, -inf  ;;  %v746_v63 = vsel %vm162_vm4, %v1156_v60, -inf  ;;  %v758_v60 = vsel %vm162_vm4, %v1172_v26, -inf }
  0xe5   :  { %217 = vst.msk [vmem:[%s1511_s1 + $0x8] sm:$0x1] %vm214_vm8, %v208_v56  ;;  %696 = vmax.xlane.f32.xlu1 %v695_v28  ;;  %v563_v28 = vsel %vm162_vm4, %v1058_v6, -inf  ;;  %v569_v56 = vsel %vm162_vm4, %v1066_v9, -inf  ;;  %v743_v6 = vsel %vm162_vm4, %v1148_v46, -inf  ;;  %v749_v9 = vsel %vm162_vm4, %v1152_v54, -inf }
  0xe6   :  { %693 = vmax.xlane.f32.xlu0 %v692_v32  ;;  %v180_v52 = vpop.xlane.xlu1 %179  ;;  %v755_v46 = vsel %vm162_vm4, %v1158_v2, -inf  ;;  %v761_v54 = vsel %vm162_vm4, %v1166_v17, -inf }
  0xe7   :  { %v177_v53 = vpop.xlane.xlu0 %176  ;;  %v211_v21 = vsel %vm205_vm7, %v202_v48, %v180_v52 }
  0xe8   :  { %v210_v49 = vsel %vm205_vm7, %v201_v55, %v177_v53  ;;  %220 = vst.msk [vmem:[%s1511_s1 + $0x14] sm:$0x1] %vm214_vm8, %v211_v21 }
  0xe9   :  { %219 = vst.msk [vmem:[%s1511_s1 + $0x10] sm:$0x1] %vm214_vm8, %v210_v49  ;;  %702 = vmax.xlane.f32.xlu1 %v701_v37 }
  0xea   :  { %699 = vmax.xlane.f32.xlu0 %v698_v59  ;;  %v186_v0 = vpop.xlane.xlu1 %185 }
  0xeb   :  { %v183_v3 = vpop.xlane.xlu0 %182  ;;  %v213_v27 = vsel %vm205_vm7, %v204_v50, %v186_v0 }
  0xec   :  { %v212_v29 = vsel %vm205_vm7, %v203_v61, %v183_v3  ;;  %222 = vst.msk [vmem:[%s1511_s1 + $0x1c] sm:$0x1] %vm214_vm8, %v213_v27 }
  0xed   :  { %221 = vst.msk [vmem:[%s1511_s1 + $0x18] sm:$0x1] %vm214_vm8, %v212_v29  ;;  %708 = vmax.xlane.f32.xlu1 %v707_v7 }
  0xee   :  { %705 = vmax.xlane.f32.xlu0 %v704_v51  ;;  %v1264_v19 = vpop.xlane.xlu1 %291 }
  0xef   :  { %v1266_v30 = vpop.xlane.xlu0 %288 }
  0xf1   :  { %714 = vmax.xlane.f32.xlu1 %v713_v11 }
  0xf2   :  { %711 = vmax.xlane.f32.xlu0 %v710_v14  ;;  %v1272_v15 = vpop.xlane.xlu1 %297 }
  0xf3   :  { %v1274_v16 = vpop.xlane.xlu0 %294 }
  0xf5   :  { %720 = vmax.xlane.f32.xlu1 %v719_v20 }
  0xf6   :  { %717 = vmax.xlane.f32.xlu0 %v716_v5  ;;  %v1280_v24 = vpop.xlane.xlu1 %303 }
  0xf7   :  { %v1282_v25 = vpop.xlane.xlu0 %300 }
  0xf9   :  { %726 = vmax.xlane.f32.xlu1 %v725_v18 }
  0xfa   :  { %723 = vmax.xlane.f32.xlu0 %v722_v31  ;;  %v1288_v33 = vpop.xlane.xlu1 %309 }
  0xfb   :  { %v1290_v34 = vpop.xlane.xlu0 %306 }
  0xfd   :  { %732 = vmax.xlane.f32.xlu1 %v731_v35 }
  0xfe   :  { %729 = vmax.xlane.f32.xlu0 %v728_v38  ;;  %v316_v39 = vpop.xlane.xlu1 %315 }
  0xff   :  { %v313_v22 = vpop.xlane.xlu0 %312  ;;  %v384_v21 = vsel %vm187_vm5, %v1264_v19, %v316_v39 }
 0x100   :  { %v383_v49 = vsel %vm187_vm5, %v1266_v30, %v313_v22 }
 0x101   :  { %738 = vmax.xlane.f32.xlu1 %v737_v4 }
 0x102   :  { %735 = vmax.xlane.f32.xlu0 %v734_v40  ;;  %v322_v13 = vpop.xlane.xlu1 %321 }
 0x103   :  { %v319_v41 = vpop.xlane.xlu0 %318  ;;  %v386_v17 = vsel %vm187_vm5, %v1272_v15, %v322_v13 }
 0x104   :  { %v385_v61 = vsel %vm187_vm5, %v1274_v16, %v319_v41 }
 0x105   :  { %561 = vmax.xlane.f32.xlu1 %v560_v42 }
 0x106   :  { %741 = vmax.xlane.f32.xlu0 %v740_v43  ;;  %v328_v44 = vpop.xlane.xlu1 %327 }
 0x107   :  { %v325_v45 = vpop.xlane.xlu0 %324  ;;  %v388_v19 = vsel %vm187_vm5, %v1280_v24, %v328_v44 }
 0x108   :  { %v387_v30 = vsel %vm187_vm5, %v1282_v25, %v325_v45 }
 0x109   :  { %567 = vmax.xlane.f32.xlu1 %v566_v47 }
 0x10a   :  { %564 = vmax.xlane.f32.xlu0 %v563_v28  ;;  %v334_v32 = vpop.xlane.xlu1 %333 }
 0x10b   :  { %v331_v62 = vpop.xlane.xlu0 %330  ;;  %v390_v24 = vsel %vm187_vm5, %v1288_v33, %v334_v32 }
 0x10c   :  { %v389_v25 = vsel %vm187_vm5, %v1290_v34, %v331_v62 }
 0x10d   :  { %573 = vmax.xlane.f32.xlu1 %v572_v58 }
 0x10e   :  { %570 = vmax.xlane.f32.xlu0 %v569_v56  ;;  %v340_v12 = vpop.xlane.xlu1 %339 }
 0x10f   :  { %v337_v57 = vpop.xlane.xlu0 %336  ;;  %v392_v2 = vsel %vm196_vm6, %v384_v21, %v340_v12 }
 0x110   :  { %v391_v26 = vsel %vm196_vm6, %v383_v49, %v337_v57 }
 0x111   :  { %747 = vmax.xlane.f32.xlu1 %v746_v63 }
 0x112   :  { %744 = vmax.xlane.f32.xlu0 %v743_v6  ;;  %v346_v48 = vpop.xlane.xlu1 %345 }
 0x113   :  { %v343_v55 = vpop.xlane.xlu0 %342  ;;  %v394_v0 = vsel %vm196_vm6, %v386_v17, %v346_v48 }
 0x114   :  { %v393_v3 = vsel %vm196_vm6, %v385_v61, %v343_v55 }
 0x115   :  { %753 = vmax.xlane.f32.xlu1 %v752_v8 }
 0x116   :  { %750 = vmax.xlane.f32.xlu0 %v749_v9  ;;  %v352_v52 = vpop.xlane.xlu1 %351 }
 0x117   :  { %v349_v53 = vpop.xlane.xlu0 %348  ;;  %v396_v11 = vsel %vm196_vm6, %v388_v19, %v352_v52 }
 0x118   :  { %v395_v14 = vsel %vm196_vm6, %v387_v30, %v349_v53 }
 0x119   :  { %759 = vmax.xlane.f32.xlu1 %v758_v60 }
 0x11a   :  { %756 = vmax.xlane.f32.xlu0 %v755_v46  ;;  %v358_v37 = vpop.xlane.xlu1 %357 }
 0x11b   :  { %v355_v59 = vpop.xlane.xlu0 %354  ;;  %v398_v18 = vsel %vm196_vm6, %v390_v24, %v358_v37 }
 0x11c   :  { %v397_v31 = vsel %vm196_vm6, %v389_v25, %v355_v59 }
 0x11d   :  { %765 = vmax.xlane.f32.xlu1 %v764_v36 }
 0x11e   :  { %762 = vmax.xlane.f32.xlu0 %v761_v54  ;;  %v364_v23 = vpop.xlane.xlu1 %363 }
 0x11f   :  { %v361_v10 = vpop.xlane.xlu0 %360  ;;  %v400_v50 = vsel %vm205_vm7, %v392_v2, %v364_v23 }
 0x120   :  { %v399_v1 = vsel %vm205_vm7, %v391_v26, %v361_v10  ;;  %408 = vst.msk [vmem:[%s1511_s1 + $0x5] sm:$0x1] %vm214_vm8, %v400_v50 }
 0x121   :  { %407 = vst.msk [vmem:[%s1511_s1 + $0x1] sm:$0x1] %vm214_vm8, %v399_v1 }
 0x122   :  { %v370_v7 = vpop.xlane.xlu1 %369 }
 0x123   :  { %v367_v51 = vpop.xlane.xlu0 %366  ;;  %v402_v27 = vsel %vm205_vm7, %v394_v0, %v370_v7 }
 0x124   :  { %v401_v29 = vsel %vm205_vm7, %v393_v3, %v367_v51  ;;  %410 = vst.msk [vmem:[%s1511_s1 + $0xd] sm:$0x1] %vm214_vm8, %v402_v27 }
 0x125   :  { %409 = vst.msk [vmem:[%s1511_s1 + $0x9] sm:$0x1] %vm214_vm8, %v401_v29 }
 0x126   :  { %v376_v15 = vpop.xlane.xlu1 %375 }
 0x127   :  { %v373_v16 = vpop.xlane.xlu0 %372  ;;  %v404_v20 = vsel %vm205_vm7, %v396_v11, %v376_v15 }
 0x128   :  { %v403_v5 = vsel %vm205_vm7, %v395_v14, %v373_v16  ;;  %412 = vst.msk [vmem:[%s1511_s1 + $0x15] sm:$0x1] %vm214_vm8, %v404_v20 }
 0x129   :  { %411 = vst.msk [vmem:[%s1511_s1 + $0x11] sm:$0x1] %vm214_vm8, %v403_v5 }
 0x12a   :  { %v382_v35 = vpop.xlane.xlu1 %381 }
 0x12b   :  { %v379_v38 = vpop.xlane.xlu0 %378  ;;  %v406_v39 = vsel %vm205_vm7, %v398_v18, %v382_v35 }
 0x12c   :  { %v405_v22 = vsel %vm205_vm7, %v397_v31, %v379_v38  ;;  %414 = vst.msk [vmem:[%s1511_s1 + $0x1d] sm:$0x1] %vm214_vm8, %v406_v39 }
 0x12d   :  { %413 = vst.msk [vmem:[%s1511_s1 + $0x19] sm:$0x1] %vm214_vm8, %v405_v22 }
 0x12e   :  { %v484_v33 = vpop.xlane.xlu1 %483 }
 0x12f   :  { %v481_v34 = vpop.xlane.xlu0 %480 }
 0x132   :  { %v490_v4 = vpop.xlane.xlu1 %489 }
 0x133   :  { %v487_v40 = vpop.xlane.xlu0 %486 }
 0x136   :  { %v496_v13 = vpop.xlane.xlu1 %495 }
 0x137   :  { %v493_v41 = vpop.xlane.xlu0 %492 }
 0x13a   :  { %v502_v42 = vpop.xlane.xlu1 %501 }
 0x13b   :  { %v499_v43 = vpop.xlane.xlu0 %498 }
 0x13e   :  { %v508_v44 = vpop.xlane.xlu1 %507 }
 0x13f   :  { %v505_v45 = vpop.xlane.xlu0 %504  ;;  %v576_v59 = vsel %vm187_vm5, %v484_v33, %v508_v44 }
 0x140   :  { %v575_v36 = vsel %vm187_vm5, %v481_v34, %v505_v45 }
 0x142   :  { %v514_v47 = vpop.xlane.xlu1 %513 }
 0x143   :  { %v511_v28 = vpop.xlane.xlu0 %510  ;;  %v578_v32 = vsel %vm187_vm5, %v490_v4, %v514_v47 }
 0x144   :  { %v577_v10 = vsel %vm187_vm5, %v487_v40, %v511_v28 }
 0x146   :  { %v520_v62 = vpop.xlane.xlu1 %519 }
 0x147   :  { %v517_v58 = vpop.xlane.xlu0 %516  ;;  %v580_v56 = vsel %vm187_vm5, %v496_v13, %v520_v62 }
 0x148   :  { %v579_v12 = vsel %vm187_vm5, %v493_v41, %v517_v58 }
 0x14a   :  { %v526_v57 = vpop.xlane.xlu1 %525 }
 0x14b   :  { %v523_v63 = vpop.xlane.xlu0 %522  ;;  %v582_v6 = vsel %vm187_vm5, %v502_v42, %v526_v57 }
 0x14c   :  { %v581_v48 = vsel %vm187_vm5, %v499_v43, %v523_v63 }
 0x14e   :  { %v532_v55 = vpop.xlane.xlu1 %531 }
 0x14f   :  { %v529_v8 = vpop.xlane.xlu0 %528  ;;  %v584_v54 = vsel %vm196_vm6, %v576_v59, %v532_v55 }
 0x150   :  { %v583_v21 = vsel %vm196_vm6, %v575_v36, %v529_v8 }
 0x152   :  { %v538_v9 = vpop.xlane.xlu1 %537 }
 0x153   :  { %v535_v52 = vpop.xlane.xlu0 %534  ;;  %v586_v33 = vsel %vm196_vm6, %v578_v32, %v538_v9 }
 0x154   :  { %v585_v50 = vsel %vm196_vm6, %v577_v10, %v535_v52 }
 0x156   :  { %v544_v53 = vpop.xlane.xlu1 %543 }
 0x157   :  { %v541_v60 = vpop.xlane.xlu0 %540  ;;  %v588_v13 = vsel %vm196_vm6, %v580_v56, %v544_v53 }
 0x158   :  { %v587_v41 = vsel %vm196_vm6, %v579_v12, %v541_v60 }
 0x15a   :  { %v550_v46 = vpop.xlane.xlu1 %549 }
 0x15b   :  { %v547_v37 = vpop.xlane.xlu0 %546  ;;  %v590_v47 = vsel %vm196_vm6, %v582_v6, %v550_v46 }
 0x15c   :  { %v589_v28 = vsel %vm196_vm6, %v581_v48, %v547_v37 }
 0x15e   :  { %v556_v49 = vpop.xlane.xlu1 %555 }
 0x15f   :  { %v553_v2 = vpop.xlane.xlu0 %552  ;;  %v592_v26 = vsel %vm205_vm7, %v584_v54, %v556_v49 }
 0x160   :  { %v591_v23 = vsel %vm205_vm7, %v583_v21, %v553_v2  ;;  %600 = vst.msk [vmem:[%s1511_s1 + $0x6] sm:$0x1] %vm214_vm8, %v592_v26 }
 0x161   :  { %599 = vst.msk [vmem:[%s1511_s1 + $0x2] sm:$0x1] %vm214_vm8, %v591_v23 }
 0x162   :  { %v673_v1 = vpop.xlane.xlu1 %672 }
 0x163   :  { %v559_v17 = vpop.xlane.xlu0 %558 }
 0x164   :  { %v593_v61 = vsel %vm205_vm7, %v585_v50, %v559_v17 }
 0x165   :  { %601 = vst.msk [vmem:[%s1511_s1 + $0xa] sm:$0x1] %vm214_vm8, %v593_v61 }
 0x166   :  { %v679_v0 = vpop.xlane.xlu1 %678 }
 0x167   :  { %v676_v3 = vpop.xlane.xlu0 %675 }
 0x16a   :  { %v685_v7 = vpop.xlane.xlu1 %684 }
 0x16b   :  { %v682_v51 = vpop.xlane.xlu0 %681 }
 0x16e   :  { %v1418_v27 = vpop.xlane.xlu1 %690 }
 0x16f   :  { %v688_v29 = vpop.xlane.xlu0 %687 }
 0x172   :  { %v697_v19 = vpop.xlane.xlu1 %696 }
 0x173   :  { %v1420_v30 = vpop.xlane.xlu0 %693  ;;  %v767_v12 = vsel %vm187_vm5, %v673_v1, %v697_v19 }
 0x176   :  { %v703_v11 = vpop.xlane.xlu1 %702 }
 0x177   :  { %v700_v14 = vpop.xlane.xlu0 %699  ;;  %v769_v52 = vsel %vm187_vm5, %v679_v0, %v703_v11 }
 0x178   :  { %v768_v57 = vsel %vm187_vm5, %v676_v3, %v700_v14 }
 0x17a   :  { %v709_v15 = vpop.xlane.xlu1 %708 }
 0x17b   :  { %v706_v16 = vpop.xlane.xlu0 %705  ;;  %v771_v21 = vsel %vm187_vm5, %v685_v7, %v709_v15 }
 0x17c   :  { %v770_v53 = vsel %vm187_vm5, %v682_v51, %v706_v16 }
 0x17e   :  { %v715_v20 = vpop.xlane.xlu1 %714 }
 0x17f   :  { %v712_v5 = vpop.xlane.xlu0 %711  ;;  %v773_v17 = vsel %vm187_vm5, %v1418_v27, %v715_v20 }
 0x180   :  { %v772_v49 = vsel %vm187_vm5, %v688_v29, %v712_v5 }
 0x182   :  { %v721_v24 = vpop.xlane.xlu1 %720 }
 0x183   :  { %v718_v25 = vpop.xlane.xlu0 %717  ;;  %v775_v63 = vsel %vm196_vm6, %v767_v12, %v721_v24 }
 0x184   :  { %v774_v61 = vsel %vm187_vm5, %v1420_v30, %v718_v25 }
 0x186   :  { %v727_v18 = vpop.xlane.xlu1 %726 }
 0x187   :  { %v724_v31 = vpop.xlane.xlu0 %723  ;;  %v777_v60 = vsel %vm196_vm6, %v769_v52, %v727_v18 }
 0x188   :  { %v776_v6 = vsel %vm196_vm6, %v768_v57, %v724_v31 }
 0x18a   :  { %v733_v35 = vpop.xlane.xlu1 %732 }
 0x18b   :  { %v730_v38 = vpop.xlane.xlu0 %729  ;;  %v779_v2 = vsel %vm196_vm6, %v771_v21, %v733_v35 }
 0x18c   :  { %v778_v46 = vsel %vm196_vm6, %v770_v53, %v730_v38 }
 0x18e   :  { %v739_v39 = vpop.xlane.xlu1 %738 }
 0x18f   :  { %v736_v22 = vpop.xlane.xlu0 %735  ;;  %v781_v0 = vsel %vm196_vm6, %v773_v17, %v739_v39 }
 0x190   :  { %v780_v26 = vsel %vm196_vm6, %v772_v49, %v736_v22 }
 0x192   :  { %v562_v34 = vpop.xlane.xlu1 %561 }
 0x193   :  { %v742_v4 = vpop.xlane.xlu0 %741  ;;  %v594_v40 = vsel %vm205_vm7, %v586_v33, %v562_v34 }
 0x194   :  { %602 = vst.msk [vmem:[%s1511_s1 + $0xe] sm:$0x1] %vm214_vm8, %v594_v40  ;;  %v782_v3 = vsel %vm196_vm6, %v774_v61, %v742_v4 }
 0x196   :  { %v568_v42 = vpop.xlane.xlu1 %567 }
 0x197   :  { %v565_v43 = vpop.xlane.xlu0 %564  ;;  %v596_v44 = vsel %vm205_vm7, %v588_v13, %v568_v42 }
 0x198   :  { %v595_v45 = vsel %vm205_vm7, %v587_v41, %v565_v43  ;;  %604 = vst.msk [vmem:[%s1511_s1 + $0x16] sm:$0x1] %vm214_vm8, %v596_v44 }
 0x199   :  { %603 = vst.msk [vmem:[%s1511_s1 + $0x12] sm:$0x1] %vm214_vm8, %v595_v45 }
 0x19a   :  { %v574_v32 = vpop.xlane.xlu1 %573 }
 0x19b   :  { %v571_v62 = vpop.xlane.xlu0 %570  ;;  %v598_v58 = vsel %vm205_vm7, %v590_v47, %v574_v32 }
 0x19c   :  { %v597_v56 = vsel %vm205_vm7, %v589_v28, %v571_v62  ;;  %606 = vst.msk [vmem:[%s1511_s1 + $0x1e] sm:$0x1] %vm214_vm8, %v598_v58 }
 0x19d   :  { %605 = vst.msk [vmem:[%s1511_s1 + $0x1a] sm:$0x1] %vm214_vm8, %v597_v56 }
 0x19e   :  { %v748_v48 = vpop.xlane.xlu1 %747 }
 0x19f   :  { %v745_v55 = vpop.xlane.xlu0 %744  ;;  %v784_v8 = vsel %vm205_vm7, %v776_v6, %v748_v48 }
 0x1a0   :  { %v783_v9 = vsel %vm205_vm7, %v775_v63, %v745_v55  ;;  %792 = vst.msk [vmem:[%s1511_s1 + $0x7] sm:$0x1] %vm214_vm8, %v784_v8 }
 0x1a1   :  { %791 = vst.msk [vmem:[%s1511_s1 + $0x3] sm:$0x1] %vm214_vm8, %v783_v9 }
 0x1a2   :  { %v754_v37 = vpop.xlane.xlu1 %753 }
 0x1a3   :  { %v751_v59 = vpop.xlane.xlu0 %750  ;;  %v786_v36 = vsel %vm205_vm7, %v778_v46, %v754_v37 }
 0x1a4   :  { %v785_v54 = vsel %vm205_vm7, %v777_v60, %v751_v59  ;;  %794 = vst.msk [vmem:[%s1511_s1 + $0xf] sm:$0x1] %vm214_vm8, %v786_v36 }
 0x1a5   :  { %793 = vst.msk [vmem:[%s1511_s1 + $0xb] sm:$0x1] %vm214_vm8, %v785_v54 }
 0x1a6   :  { %v760_v23 = vpop.xlane.xlu1 %759 }
 0x1a7   :  { %v757_v10 = vpop.xlane.xlu0 %756  ;;  %v788_v50 = vsel %vm205_vm7, %v780_v26, %v760_v23 }
 0x1a8   :  { %v787_v1 = vsel %vm205_vm7, %v779_v2, %v757_v10  ;;  %796 = vst.msk [vmem:[%s1511_s1 + $0x17] sm:$0x1] %vm214_vm8, %v788_v50 }
 0x1a9   :  { %795 = vst.msk [vmem:[%s1511_s1 + $0x13] sm:$0x1] %vm214_vm8, %v787_v1 }
 0x1aa   :  { %v766_v7 = vpop.xlane.xlu1 %765 }
 0x1ab   :  { %v763_v51 = vpop.xlane.xlu0 %762  ;;  %v790_v29 = vsel %vm205_vm7, %v782_v3, %v766_v7 }
 0x1ac   :  { %v789_v19 = vsel %vm205_vm7, %v781_v0, %v763_v51  ;;  %798 = vst.msk [vmem:[%s1511_s1 + $0x1f] sm:$0x1] %vm214_vm8, %v790_v29 }
 0x1ad   :  { %797 = vst.msk [vmem:[%s1511_s1 + $0x1b] sm:$0x1] %vm214_vm8, %v789_v19 }
 0x1ae   :  { %803 = vsyncpa [#allocation3], 1 }

</bundles_post_ra>
